<compile_context>
chip_gen: v6e
topology: v6e:2x2x1
jax: 0.10.0
libtpu: 0.0.40
codegen_flags: <defaults>
</compile_context>

<pallas_src>
import functools

import jax
import jax.numpy as jnp
from jax import lax
from jax.experimental import pallas as pl
from jax.experimental.pallas import tpu as pltpu

LANE = 128
SUBL = 8
MAX_TR = 1024          # row tile: 1024*128*4B = 512 KiB per f32 input block
CHUNK_MAX = 32         # strip-mine chunk: 32*128*4B = 16 KiB = 4 vregs / value

GAMMA = 2.0            # pow(., 2) inlined as x*x
ALPHA = 4.0            # pow(., 4) inlined as (x*x)^2


def _focal_loss_kernel(pred_ref, tgt_ref, loss_ref, pos_ref, *,
                       valid_rows, chunk, need_mask):
    tr = pred_ref.shape[0]
    n_chunks = tr // chunk

    # Per-core resident (8,128) accumulators: init on the first step of the
    # "arbitrary" (reduction) grid axis.
    @pl.when(pl.program_id(1) == 0)
    def _():
        loss_ref[...] = jnp.zeros_like(loss_ref)
        pos_ref[...] = jnp.zeros_like(pos_ref)

    def run_tile(rem_rows):
        """Process the whole (tr,128) tile in `chunk`-row strips.

        rem_rows is None for the unmasked fast path, otherwise the traced
        number of valid rows remaining in this tile (0 < rem_rows < tr).
        """
        if rem_rows is not None:
            # Hoisted out of the loop (JAX does not CSE broadcast_in_dim).
            row_iota = lax.broadcasted_iota(jnp.int32, (chunk, LANE), 0)

        def chunk_step(c, carry):
            loss_acc, pos_acc = carry
            r0 = pl.multiple_of(c * chunk, chunk)
            pred = pred_ref[pl.ds(r0, chunk), :].astype(jnp.float32)
            tgt = tgt_ref[pl.ds(r0, chunk), :].astype(jnp.float32)

            if rem_rows is not None:
                # Row-granular tail mask (wrapper guarantees the valid region
                # is already 128-lane aligned, so no per-element index needed).
                valid = row_iota < (rem_rows - c * chunk)
                pred = jnp.where(valid, pred, 0.5)   # finite logs on pad rows
                tgt = jnp.where(valid, tgt, 2.0)     # neither pos nor neg

            pos_mask = tgt == 1.0
            # (neg_inds - ign_inds) of the reference == (0 <= target < 1)
            neg_mask = jnp.logical_and(tgt >= 0.0, tgt < 1.0)

            one_m_p = 1.0 - pred
            omp2 = one_m_p * one_m_p          # (1 - pred)^gamma, gamma = 2
            p_sq = pred * pred                # pred^gamma
            one_m_t = 1.0 - tgt
            omt2 = one_m_t * one_m_t
            omt4 = omt2 * omt2                # (1 - target)^alpha, alpha = 4

            # pos / neg branches are mutually exclusive -> one fused log/elem.
            w = jnp.where(pos_mask, omp2, jnp.where(neg_mask, omt4 * p_sq, 0.0))
            sel = jnp.where(pos_mask, pred, one_m_p)
            loss = -jnp.log(sel) * w
            pos_f = pos_mask.astype(jnp.float32)

            # Fold (chunk,128) -> (8,128) with VALU adds (reshape splits the
            # row axis at vreg boundaries -> no relayout).
            loss_acc = loss_acc + loss.reshape(chunk // SUBL, SUBL, LANE).sum(0)
            pos_acc = pos_acc + pos_f.reshape(chunk // SUBL, SUBL, LANE).sum(0)
            return loss_acc, pos_acc

        init = (jnp.zeros((SUBL, LANE), jnp.float32),
                jnp.zeros((SUBL, LANE), jnp.float32))
        loss_acc, pos_acc = lax.fori_loop(0, n_chunks, chunk_step, init,
                                          unroll=True)
        loss_ref[...] += loss_acc
        pos_ref[...] += pos_acc

    if need_mask:
        # Logical (unclamped) tile index; the BlockSpec index_map clamps the
        # DMA source so it always stays in bounds.
        b = pl.program_id(0) * pl.num_programs(1) + pl.program_id(1)
        rem_rows = valid_rows - b * tr

        @pl.when(rem_rows >= tr)          # full tile: unmasked fast path
        def _():
            run_tile(None)

        @pl.when(jnp.logical_and(rem_rows > 0, rem_rows < tr))
        def _():                          # genuine tail tile: row-masked
            run_tile(rem_rows)
        # rem_rows <= 0 (clamped duplicate tile): skip all compute.
    else:
        run_tile(None)


def _focal_pieces_xla(pred, tgt):
    """Tiny XLA-side focal-loss pieces (for the <128-element ragged tail)."""
    pred = pred.astype(jnp.float32)
    tgt = tgt.astype(jnp.float32)
    pos_mask = tgt == 1.0
    neg_mask = jnp.logical_and(tgt >= 0.0, tgt < 1.0)
    one_m_p = 1.0 - pred
    omt2 = (1.0 - tgt) * (1.0 - tgt)
    w = jnp.where(pos_mask, one_m_p * one_m_p,
                  jnp.where(neg_mask, omt2 * omt2 * pred * pred, 0.0))
    sel = jnp.where(pos_mask, pred, one_m_p)
    loss = -jnp.log(sel) * w
    return loss.sum(), pos_mask.astype(jnp.float32).sum()


def _num_core_split():
    """2-way split only on multi-TensorCore (v7x-class) chips."""
    try:
        kind = jax.devices()[0].device_kind.lower()
    except Exception:
        return 1
    return 2 if ("v7" in kind or "7x" in kind) else 1


def cls_loss_pallas(pred, target, factor=1.0):
    """Focal classification loss (CornerNet style). pred/target: same shape."""
    assert pred.shape == target.shape
    n = 1
    for d in pred.shape:
        n *= int(d)

    flat_p = pred.reshape(-1)
    flat_t = target.reshape(-1)

    # Ragged (<128-element) tail handled in XLA -> no full-array pad copy.
    n_tail = n % LANE
    n_main = n - n_tail
    if n_tail:
        tail_loss, tail_pos = _focal_pieces_xla(flat_p[n_main:], flat_t[n_main:])
    else:
        tail_loss = jnp.float32(0.0)
        tail_pos = jnp.float32(0.0)

    if n_main == 0:
        loss_sum, pos_sum = tail_loss, tail_pos
        denom = jnp.maximum(jnp.float32(1.0), pos_sum)
        return (loss_sum / denom) * jnp.float32(factor)

    main_p = flat_p[:n_main] if n_tail else flat_p
    main_t = flat_t[:n_main] if n_tail else flat_t
    rows = n_main // LANE

    if rows < MAX_TR:
        # One tile = whole slab. Tiny zero pad (loss/count neutral, no mask
        # needed) only when the row count is not sublane aligned.
        tr = -(-rows // SUBL) * SUBL
        pad_rows = tr - rows
        if pad_rows:
            main_p = jnp.pad(main_p, (0, pad_rows * LANE))
            main_t = jnp.pad(main_t, (0, pad_rows * LANE))
            rows = tr
    else:
        tr = MAX_TR
    # TODO(synk): a 1-D BlockSpec would make the sub-tile unaligned case
    # copy-free as well.

    p2d = main_p.reshape(rows, LANE)
    t2d = main_t.reshape(rows, LANE)

    chunk = CHUNK_MAX
    while tr % chunk:
        chunk //= 2          # tr is always a multiple of 8, so chunk >= 8

    total_tiles = -(-rows // tr)
    num_split = _num_core_split() if total_tiles > 1 else 1
    num_split = min(num_split, total_tiles)
    n_inner = -(-total_tiles // num_split)
    grid = (num_split, n_inner)

    # Mask only when a tile can contain data that is not genuine zero-padded
    # input: a partial tail tile or a duplicated (clamped) tile from the split.
    need_mask = (rows % tr != 0) or (num_split * n_inner != total_tiles)

    def in_map(c, i):
        b = c * n_inner + i
        return (jnp.minimum(b, total_tiles - 1), 0)  # clamp: DMA stays in bounds

    out_map = lambda c, i: (c, 0)

    if num_split > 1:
        dim_sem = (getattr(pltpu, "CORE_PARALLEL", "parallel"),
                   getattr(pltpu, "ARBITRARY", "arbitrary"))
    else:
        dim_sem = ("arbitrary", "arbitrary")

    kernel = functools.partial(_focal_loss_kernel, valid_rows=rows,
                               chunk=chunk, need_mask=need_mask)

    n_kernel = rows * LANE
    in_bytes = (p2d.size * p2d.dtype.itemsize + t2d.size * t2d.dtype.itemsize)
    cost = pl.CostEstimate(
        flops=16 * n_kernel,
        transcendentals=n_kernel,
        bytes_accessed=in_bytes + 2 * num_split * SUBL * LANE * 4,
    )

    loss_part, pos_part = pl.pallas_call(
        kernel,
        out_shape=(
            jax.ShapeDtypeStruct((num_split * SUBL, LANE), jnp.float32),
            jax.ShapeDtypeStruct((num_split * SUBL, LANE), jnp.float32),
        ),
        grid=grid,
        in_specs=[
            pl.BlockSpec((tr, LANE), in_map),
            pl.BlockSpec((tr, LANE), in_map),
        ],
        out_specs=(
            pl.BlockSpec((SUBL, LANE), out_map),
            pl.BlockSpec((SUBL, LANE), out_map),
        ),
        compiler_params=pltpu.CompilerParams(dimension_semantics=dim_sem),
        cost_estimate=cost,
    )(p2d, t2d)

    # Tiny reductions + epilogue in XLA.
    loss_sum = jnp.sum(loss_part) + tail_loss
    pos_sum = jnp.sum(pos_part) + tail_pos
    denom = jnp.maximum(jnp.float32(1.0), pos_sum)
    return (loss_sum / denom) * jnp.float32(factor)


def _cls_loss_ref(pred, target, factor=1.0):
    pred = pred.astype(jnp.float32)
    target = target.astype(jnp.float32)
    pos_inds = (target == 1.0).astype(jnp.float32)
    neg_inds = (target < 1.0).astype(jnp.float32)
    ign_inds = (target < 0.0).astype(jnp.float32)
    pos_w = pos_inds * jnp.power(1.0 - pred, GAMMA)
    neg_w = (neg_inds - ign_inds) * jnp.power(1.0 - target, ALPHA) * jnp.power(pred, GAMMA)
    loss = -jnp.log(pred) * pos_w + -jnp.log(1.0 - pred) * neg_w
    return loss.sum() / jnp.maximum(1.0, pos_inds.sum()) * factor


if __name__ == "__main__":
    key = jax.random.PRNGKey(0)
    k1, k2, k3 = jax.random.split(key, 3)

    B, C, H, W = 2, 4, 16, 16  # NCHW, small detection heatmap
    # Predictions: sigmoid outputs strictly in (0, 1).
    pred = jax.nn.sigmoid(jax.random.normal(k1, (B, C, H, W), jnp.float32))
    # Targets: Gaussian-splat style heatmap in [0, 1) with some exact 1.0 peaks.
    base = jax.random.uniform(k2, (B, C, H, W), jnp.float32, 0.0, 0.95)
    peaks = jax.random.uniform(k3, (B, C, H, W), jnp.float32) > 0.97
    target = jnp.where(peaks, 1.0, base)

    out = jax.block_until_ready(cls_loss_pallas(pred, target, factor=1.0))
    ref = jax.block_until_ready(_cls_loss_ref(pred, target, factor=1.0))
    assert jnp.allclose(out, ref, rtol=1e-5, atol=1e-5), (out, ref)

    print("KERNEL_OK")
</pallas_src>

<mosaic_0001>
module attributes {stable_mosaic.version = 11 : i64} {
  func.func @_focal_loss_kernel(%arg0: i32, %arg1: i32, %arg2: memref<16x128xf32, #tpu.memory_space<vmem>>, %arg3: memref<16x128xf32, #tpu.memory_space<vmem>>, %arg4: memref<8x128xf32, #tpu.memory_space<vmem>>, %arg5: memref<8x128xf32, #tpu.memory_space<vmem>>) attributes {dimension_semantics = [#tpu.dimension_semantics<arbitrary>, #tpu.dimension_semantics<arbitrary>], iteration_bounds = array<i64: 1, 1>, scalar_prefetch = 0 : i64, scratch_operands = 0 : i64, tpu.core_type = #tpu.core_type<tc>, window_params = [{transform_indices = @transform_0, window_bounds = array<i64: 16, 128>}, {transform_indices = @transform_1, window_bounds = array<i64: 16, 128>}, {transform_indices = @transform_2, window_bounds = array<i64: 8, 128>}, {transform_indices = @transform_3, window_bounds = array<i64: 8, 128>}]} {
    %c0_i32 = arith.constant 0 : i32
    %0 = arith.cmpi eq, %arg1, %c0_i32 : i32
    %1 = arith.extui %0 : i1 to i32
    %c0_i32_0 = arith.constant 0 : i32
    %2 = arith.cmpi ne, %1, %c0_i32_0 : i32
    scf.if %2 {
      %cst_21 = arith.constant 0.000000e+00 : f32
      %49 = vector.broadcast %cst_21 : f32 to vector<8x128xf32>
      %c0_22 = arith.constant 0 : index
      %c0_23 = arith.constant 0 : index
      %50 = vector.load %arg4[%c0_22, %c0_23] : memref<8x128xf32, #tpu.memory_space<vmem>>, vector<8x128xf32>
      tpu.vector_store %arg4[%c0_22, %c0_23], %49 {strides = array<i32>} : memref<8x128xf32, #tpu.memory_space<vmem>>, vector<8x128xf32>,
      %cst_24 = arith.constant 0.000000e+00 : f32
      %51 = vector.broadcast %cst_24 : f32 to vector<8x128xf32>
      %c0_25 = arith.constant 0 : index
      %c0_26 = arith.constant 0 : index
      %52 = vector.load %arg5[%c0_25, %c0_26] : memref<8x128xf32, #tpu.memory_space<vmem>>, vector<8x128xf32>
      tpu.vector_store %arg5[%c0_25, %c0_26], %51 {strides = array<i32>} : memref<8x128xf32, #tpu.memory_space<vmem>>, vector<8x128xf32>,
    } else {
    }
    %cst = arith.constant 0.000000e+00 : f32
    %3 = vector.broadcast %cst : f32 to vector<8x128xf32>
    %cst_1 = arith.constant 0.000000e+00 : f32
    %4 = vector.broadcast %cst_1 : f32 to vector<8x128xf32>
    %c0_i32_2 = arith.constant 0 : i32
    %c16_i32 = arith.constant 16 : i32
    %5 = arith.muli %c0_i32_2, %c16_i32 : i32
    %6 = tpu.assume_multiple %5, 16 : i32
    %7 = arith.index_cast %6 : i32 to index
    %c0 = arith.constant 0 : index
    %8 = vector.load %arg2[%7, %c0] : memref<16x128xf32, #tpu.memory_space<vmem>>, vector<16x128xf32>
    %9 = arith.index_cast %6 : i32 to index
    %c0_3 = arith.constant 0 : index
    %10 = vector.load %arg3[%9, %c0_3] : memref<16x128xf32, #tpu.memory_space<vmem>>, vector<16x128xf32>
    %cst_4 = arith.constant 1.000000e+00 : f32
    %11 = vector.broadcast %cst_4 : f32 to vector<16x128xf32>
    %12 = arith.cmpf oeq, %10, %11 : vector<16x128xf32>
    %cst_5 = arith.constant 0.000000e+00 : f32
    %13 = vector.broadcast %cst_5 : f32 to vector<16x128xf32>
    %14 = arith.cmpf oge, %10, %13 : vector<16x128xf32>
    %cst_6 = arith.constant 1.000000e+00 : f32
    %15 = vector.broadcast %cst_6 : f32 to vector<16x128xf32>
    %16 = arith.cmpf olt, %10, %15 : vector<16x128xf32>
    %17 = arith.andi %14, %16 : vector<16x128xi1>
    %cst_7 = arith.constant 1.000000e+00 : f32
    %18 = vector.broadcast %cst_7 : f32 to vector<16x128xf32>
    %19 = arith.subf %18, %8 : vector<16x128xf32>
    %20 = arith.mulf %19, %19 : vector<16x128xf32>
    %21 = arith.mulf %8, %8 : vector<16x128xf32>
    %cst_8 = arith.constant 1.000000e+00 : f32
    %22 = vector.broadcast %cst_8 : f32 to vector<16x128xf32>
    %23 = arith.subf %22, %10 : vector<16x128xf32>
    %24 = arith.mulf %23, %23 : vector<16x128xf32>
    %25 = arith.mulf %24, %24 : vector<16x128xf32>
    %26 = arith.mulf %25, %21 : vector<16x128xf32>
    %cst_9 = arith.constant 0.000000e+00 : f32
    %27 = vector.broadcast %cst_9 : f32 to vector<16x128xf32>
    %28 = arith.select %17, %26, %27 : vector<16x128xi1>, vector<16x128xf32>
    %29 = arith.select %12, %20, %28 : vector<16x128xi1>, vector<16x128xf32>
    %30 = arith.select %12, %8, %19 : vector<16x128xi1>, vector<16x128xf32>
    %31 = math.log %30 : vector<16x128xf32>
    %cst_10 = arith.constant 0.000000e+00 : f32
    %32 = vector.broadcast %cst_10 : f32 to vector<16x128xf32>
    %33 = arith.subf %32, %31 : vector<16x128xf32>
    %34 = arith.mulf %33, %29 : vector<16x128xf32>
    %35 = arith.extui %12 : vector<16x128xi1> to vector<16x128xi32>
    %36 = arith.sitofp %35 : vector<16x128xi32> to vector<16x128xf32>
    %37 = vector.shape_cast %34 : vector<16x128xf32> to vector<2x8x128xf32>
    %cst_11 = arith.constant dense<0.000000e+00> : vector<8x128xf32>
    %38 = vector.multi_reduction <add>, %37, %cst_11 [0] : vector<2x8x128xf32> to vector<8x128xf32>
    %39 = arith.addf %3, %38 : vector<8x128xf32>
    %40 = vector.shape_cast %36 : vector<16x128xf32> to vector<2x8x128xf32>
    %cst_12 = arith.constant dense<0.000000e+00> : vector<8x128xf32>
    %41 = vector.multi_reduction <add>, %40, %cst_12 [0] : vector<2x8x128xf32> to vector<8x128xf32>
    %42 = arith.addf %4, %41 : vector<8x128xf32>
    %c1_i32 = arith.constant 1 : i32
    %c0_13 = arith.constant 0 : index
    %c0_14 = arith.constant 0 : index
    %43 = vector.load %arg4[%c0_13, %c0_14] : memref<8x128xf32, #tpu.memory_space<vmem>>, vector<8x128xf32>
    %44 = arith.addf %43, %39 : vector<8x128xf32>
    %c0_15 = arith.constant 0 : index
    %c0_16 = arith.constant 0 : index
    %45 = vector.load %arg4[%c0_15, %c0_16] : memref<8x128xf32, #tpu.memory_space<vmem>>, vector<8x128xf32>
    tpu.vector_store %arg4[%c0_15, %c0_16], %44 {strides = array<i32>} : memref<8x128xf32, #tpu.memory_space<vmem>>, vector<8x128xf32>,
    %c0_17 = arith.constant 0 : index
    %c0_18 = arith.constant 0 : index
    %46 = vector.load %arg5[%c0_17, %c0_18] : memref<8x128xf32, #tpu.memory_space<vmem>>, vector<8x128xf32>
    %47 = arith.addf %46, %42 : vector<8x128xf32>
    %c0_19 = arith.constant 0 : index
    %c0_20 = arith.constant 0 : index
    %48 = vector.load %arg5[%c0_19, %c0_20] : memref<8x128xf32, #tpu.memory_space<vmem>>, vector<8x128xf32>
    tpu.vector_store %arg5[%c0_19, %c0_20], %47 {strides = array<i32>} : memref<8x128xf32, #tpu.memory_space<vmem>>, vector<8x128xf32>,
    return
  }
  func.func @transform_0(%arg0: i32, %arg1: i32) -> (i32, i32) {
    %c1_i32 = arith.constant 1 : i32
    %0 = arith.muli %arg0, %c1_i32 : i32
    %1 = arith.addi %0, %arg1 : i32
    %c0_i32 = arith.constant 0 : i32
    %2 = arith.minsi %1, %c0_i32 : i32
    %c0_i32_0 = arith.constant 0 : i32
    %c0_i32_1 = arith.constant 0 : i32
    return %2, %c0_i32_0 : i32, i32
  }
  func.func @transform_1(%arg0: i32, %arg1: i32) -> (i32, i32) {
    %c1_i32 = arith.constant 1 : i32
    %0 = arith.muli %arg0, %c1_i32 : i32
    %1 = arith.addi %0, %arg1 : i32
    %c0_i32 = arith.constant 0 : i32
    %2 = arith.minsi %1, %c0_i32 : i32
    %c0_i32_0 = arith.constant 0 : i32
    %c0_i32_1 = arith.constant 0 : i32
    return %2, %c0_i32_0 : i32, i32
  }
  func.func @transform_2(%arg0: i32, %arg1: i32) -> (i32, i32) {
    %c0_i32 = arith.constant 0 : i32
    %c0_i32_0 = arith.constant 0 : i32
    return %arg0, %c0_i32 : i32, i32
  }
  func.func @transform_3(%arg0: i32, %arg1: i32) -> (i32, i32) {
    %c0_i32 = arith.constant 0 : i32
    %c0_i32_0 = arith.constant 0 : i32
    return %arg0, %c0_i32 : i32, i32
  }
}

</mosaic_0001>

<bundles_post_ra>
// kernel: tpu_custom_call.1
= control target key start
LH: loop header
LB: loop body
LE: loop exit
PB: predicated region body
PF: predicated region fallthrough
CT: control target
= control target key end

     0   :  { %9 = vsyncpa [#allocation3], 0  ;;  %s303_s0 = inlined_call_operand.hbm [shape: f32[16,128], index: 0, kind: input, shape index: {}]   ;;  %s304_s1 = inlined_call_operand.hbm [shape: f32[16,128], index: 1, kind: input, shape index: {}]   ;;  %s305_s2 = inlined_call_operand.hbm [shape: f32[8,128], index: 2, kind: output, shape index: {0}]   ;;  %s306_s3 = inlined_call_operand.hbm [shape: f32[8,128], index: 3, kind: output, shape index: {1}]  }
   0x1   :  { %10 = vsyncpa [#allocation6], 0 }
   0x2   :  { %11 = vsyncpa [#allocation4], 0 }
   0x3   :  { %12 = vsyncpa [#allocation9], 0  ;;  %s258_s12 = smov [#allocation2]  }
   0x4   :  { %s24_s13 = sshll.u32 %s258_s12, 4  ;;  %s25_s13 = int_to_ptr.vmem [resolvable:$true] %s24_s13 }
   0x5   :  { %s178_s14 = scalar_lea.vmem %s25_s13, 256  ;;  %p183_p1 = scmp.lt.s32.totalorder %s25_s13, %s25_s13 }
   0x6   :  { %p179_p0 = scmp.ne.s32.totalorder %s25_s13, %s178_s14  ;;  %p184_p2 = scmp.lt.s32.totalorder %s178_s14, %s178_s14 }
   0x8   :  { %p185_p3 = por %p184_p2, %p183_p1 }
   0xa   :  { %p186_p4 = pnand %p185_p3, %p179_p0 }
   0xc   :  { %189 = shalt.err (!%p186_p4)
}
   0xd   :  { %s259_s15 = smov 128   ;;  %s260_s16 = smov 8  }
   0xe   :  { %30 = dma.hbm_to_vmem [thread:$0]  %s303_s0, 256, %s25_s13, [#allocation3], %s259_s15, %s259_s15, %s260_s16  }
   0xf   :  { %s261_s19 = smov [#allocation5]  }
  0x10   :  { %s42_s20 = sshll.u32 %s261_s19, 4  ;;  %s43_s20 = int_to_ptr.vmem [resolvable:$true] %s42_s20 }
  0x11   :  { %s198_s21 = scalar_lea.vmem %s43_s20, 256  ;;  %p203_p6 = scmp.lt.s32.totalorder %s43_s20, %s43_s20 }
  0x12   :  { %p199_p5 = scmp.ne.s32.totalorder %s43_s20, %s198_s21  ;;  %p204_p7 = scmp.lt.s32.totalorder %s198_s21, %s198_s21 }
  0x14   :  { %p205_p8 = por %p204_p7, %p203_p6 }
  0x16   :  { %p206_p9 = pnand %p205_p8, %p199_p5 }
  0x18   :  { %209 = shalt.err (!%p206_p9)
}
  0x19   :  { %48 = dma.hbm_to_vmem [thread:$0]  %s304_s1, 256, %s43_s20, [#allocation6], %s259_s15, %s259_s15, %s260_s16  }
  0x1a   :  { %250 = dma.done.wait [#allocation3], 256  }
  0x1b   :  { %251 = vsyncadd [#allocation3], 4294967040 }
  0x1c   :  { %252 = dma.done.wait [#allocation6], 256  }
  0x1d   :  { %253 = vsyncadd [#allocation6], 4294967040  ;;  %v69_v0 = vld [vmem:[#allocation2] sm:$0xff]  ;;  %v70_v1 = vld [vmem:[#allocation2 + $0x8] sm:$0xff]  ;;  %v262_v11 = vmov 0.0   ;;  %s263_s0 = smov [#allocation8]  }
  0x1e   :  { %v71_v2 = vld [vmem:[#allocation5] sm:$0xff]  ;;  %v72_v3 = vld [vmem:[#allocation5 + $0x8] sm:$0xff]  ;;  %v81_v4 = vsub.f32 1.0, %v69_v0  ;;  %v82_v5 = vsub.f32 1.0, %v70_v1  ;;  %s139_s1 = sshll.u32 %s263_s0, 4  ;;  %v85_v16 = vmul.f32 %v69_v0, %v69_v0  ;;  %v86_v18 = vmul.f32 %v70_v1, %v70_v1  ;;  %s140_s1 = int_to_ptr.vmem [resolvable:$true] %s139_s1 }
  0x1f   :  { %vm73_vm0 = vcmp.eq.f32.partialorder %v71_v2, 1.0  ;;  %vm74_vm1 = vcmp.eq.f32.partialorder %v72_v3, 1.0  ;;  %v87_v6 = vsub.f32 1.0, %v71_v2  ;;  %v88_v7 = vsub.f32 1.0, %v72_v3  ;;  %s210_s24 = scalar_lea.vmem %s140_s1, 128  ;;  %p215_p11 = scmp.lt.s32.totalorder %s140_s1, %s140_s1 }
  0x20   :  { %v99_v8 = vsel %vm73_vm0, %v69_v0, %v81_v4  ;;  %v100_v9 = vsel %vm74_vm1, %v70_v1, %v82_v5  ;;  %v157_v12 = vsel %vm73_vm0, 1.0, %v262_v11  ;;  %v158_v13 = vsel %vm74_vm1, 1.0, %v262_v11  ;;  %p211_p10 = scmp.ne.s32.totalorder %s140_s1, %s210_s24  ;;  %p216_p12 = scmp.lt.s32.totalorder %s210_s24, %s210_s24 }
  0x21   :  { %v89_v10 = vmul.f32 %v87_v6, %v87_v6  ;;  %166 = vlog2.f32 %v99_v8  ;;  %v90_v14 = vmul.f32 %v88_v7, %v88_v7  ;;  %v115_v15 = vadd.f32 %v158_v13, %v157_v12 }
  0x22   :  { %168 = vlog2.f32 %v100_v9  ;;  %vm75_vm2 = vcmp.ge.f32.partialorder %v71_v2, 0.0  ;;  %vm77_vm3 = vcmp.lt.f32.partialorder %v71_v2, 1.0  ;;  %p217_p13 = por %p216_p12, %p215_p11 }
  0x23   :  { %v91_v17 = vmul.f32 %v89_v10, %v89_v10  ;;  %v92_v19 = vmul.f32 %v90_v14, %v90_v14  ;;  %122 = vst [vmem:[#allocation8] sm:$0xff] %v115_v15 }
  0x24   :  { %p218_p0 = pnand %p217_p13, %p211_p10 }
  0x26   :  { %221 = shalt.err (!%p218_p0)
}
  0x27   :  { %142 = dma.vmem_to_hbm [thread:$0]  %s140_s1, 128, %s306_s3, [#allocation9]   ;;  %vm76_vm4 = vcmp.ge.f32.partialorder %v72_v3, 0.0  ;;  %vm78_vm5 = vcmp.lt.f32.partialorder %v72_v3, 1.0  ;;  %v93_v20 = vmul.f32 %v91_v17, %v85_v16  ;;  %vm79_vm6 = vmand %vm75_vm2, %vm77_vm3  ;;  %v94_v21 = vmul.f32 %v92_v19, %v86_v18 }
  0x28   :  { %vm80_vm7 = vmand %vm76_vm4, %vm78_vm5  ;;  %v83_v22 = vmul.f32 %v81_v4, %v81_v4  ;;  %v84_v23 = vmul.f32 %v82_v5, %v82_v5  ;;  %s264_s3 = smov [#allocation7]  }
  0x29   :  { %v95_v24 = vsel %vm79_vm6, %v93_v20, 0.0  ;;  %v96_v26 = vsel %vm80_vm7, %v94_v21, 0.0  ;;  %s129_s27 = sshll.u32 %s264_s3, 4  ;;  %s130_s27 = int_to_ptr.vmem [resolvable:$true] %s129_s27 }
  0x2a   :  { %v97_v29 = vsel %vm73_vm0, %v83_v22, %v95_v24  ;;  %v98_v31 = vsel %vm74_vm1, %v84_v23, %v96_v26  ;;  %s230_s28 = scalar_lea.vmem %s130_s27, 128  ;;  %p235_p2 = scmp.lt.s32.totalorder %s130_s27, %s130_s27 }
  0x2b   :  { %p231_p1 = scmp.ne.s32.totalorder %s130_s27, %s230_s28  ;;  %p236_p3 = scmp.lt.s32.totalorder %s230_s28, %s230_s28 }
  0x2d   :  { %p237_p4 = por %p236_p3, %p235_p2 }
  0x2e   :  { %v167_v25 = vpop.eup %166 }
  0x2f   :  { %v169_v27 = vpop.eup %168  ;;  %v102_v28 = vmul.f32 0.6931472, %v167_v25  ;;  %p238_p5 = pnand %p237_p4, %p231_p1 }
  0x30   :  { %v104_v30 = vmul.f32 0.6931472, %v169_v27 }
  0x31   :  { %v105_v32 = vsub.f32 0.0, %v102_v28 }
  0x32   :  { %v106_v33 = vsub.f32 0.0, %v104_v30 }
  0x33   :  { %v107_v34 = vmul.f32 %v105_v32, %v97_v29 }
  0x34   :  { %v108_v35 = vmul.f32 %v106_v33, %v98_v31 }
  0x36   :  { %v113_v36 = vadd.f32 %v108_v35, %v107_v34 }
  0x38   :  { %119 = vst [vmem:[#allocation7] sm:$0xff] %v113_v36 }
  0x39   :  { %241 = shalt.err (!%p238_p5)
}
  0x3a   :  { %132 = dma.vmem_to_hbm [thread:$0]  %s130_s27, 128, %s305_s2, [#allocation4]  }
  0x3b   :  { %254 = dma.done.wait [#allocation4], 128  }
  0x3c   :  { %255 = vsyncadd [#allocation4], 4294967168 }
  0x3d   :  { %256 = dma.done.wait [#allocation9], 128  }
  0x3e   :  { %257 = vsyncadd [#allocation9], 4294967168 }
  0x3f   :  { %149 = vsyncpa [#allocation3], 1 }
  0x40   :  { %150 = vsyncpa [#allocation6], 1 }
  0x41   :  { %151 = vsyncpa [#allocation4], 1 }
  0x42   :  { %152 = vsyncpa [#allocation9], 1 }

</bundles_post_ra>
